<compile_context>
chip_gen: v7x
topology: tpu7x:2x2x1
jax: 0.10.0
libtpu: 0.0.40
codegen_flags: <defaults>
</compile_context>

<pallas_src>
import functools

import jax
import jax.numpy as jnp
from jax import lax
from jax.experimental import pallas as pl
from jax.experimental.pallas import tpu as pltpu


def _round_up(x, m):
    return (x + m - 1) // m * m


def _vmem_capacity_bytes():
    try:
        return int(pltpu.get_tpu_info().vmem_capacity_bytes)
    except Exception:
        return 64 * 1024 * 1024  # conservative fallback (v7x per-TC size)


def _hard_voting_kernel(w_ref, b_ref, *refs, num_branches, pool_type, fold,
                        embed_dim, out_dim, seq_folded, inv_seq, mask_tail):
    x_refs = refs[:num_branches]            # K refs, each (TB, TS, EF)
    o_ref = refs[num_branches]              # (TB, Opad)
    acc_ref = refs[num_branches + 1]        # (K, TB, EF) f32 scratch

    si = pl.program_id(1)
    n_s = pl.num_programs(1)
    TB, TS, EF = x_refs[0].shape
    Opad = o_ref.shape[1]

    neutral = 0.0 if pool_type == "avg" else -jnp.inf

    @pl.when(si == 0)
    def _init():
        acc_ref[...] = jnp.full(acc_ref.shape, neutral, acc_ref.dtype)

    if mask_tail:
        t_idx = lax.broadcasted_iota(jnp.int32, (1, TS, 1), 1)
        valid = (si * TS + t_idx) < seq_folded

    # K is small and static: unrolled Python loop over the separate branch refs.
    for k in range(num_branches):
        chunk = x_refs[k][...].astype(jnp.float32)          # (TB, TS, EF), fused cast
        if mask_tail:
            chunk = jnp.where(valid, chunk, neutral)
        if pool_type == "avg":
            acc_ref[k] = acc_ref[k] + jnp.sum(chunk, axis=1)
        else:
            acc_ref[k] = jnp.maximum(acc_ref[k], jnp.max(chunk, axis=1))

    @pl.when(si == n_s - 1)
    def _finalize():
        class_iota = lax.broadcasted_iota(jnp.int32, (TB, Opad), 1)
        votes = jnp.zeros((TB, Opad), jnp.float32)
        for k in range(num_branches):
            a = acc_ref[k]                                  # (TB, EF) f32
            if fold > 1:
                a = a.reshape(TB, fold, embed_dim)          # undo the lane fold
                a = jnp.sum(a, axis=1) if pool_type == "avg" else jnp.max(a, axis=1)
            if pool_type == "avg":
                a = a * inv_seq
            wk = w_ref[k].astype(jnp.float32)               # (E, O)
            bk = b_ref[k].astype(jnp.float32)               # (1, O)
            logits = jnp.dot(a, wk, preferred_element_type=jnp.float32) + bk
            # ReLU kept: with all-negative logits every class clamps to 0 and
            # the first class wins the tie, matching torch relu+softmax+argmax.
            act = jnp.maximum(logits, 0.0)                  # (TB, O)
            # Softmax omitted: strictly monotone, so the argmax (vote) is identical.
            amax = jnp.max(act, axis=1, keepdims=True)
            o_iota = lax.broadcasted_iota(jnp.int32, (TB, out_dim), 1)
            first = jnp.min(jnp.where(act == amax, o_iota, out_dim),
                            axis=1, keepdims=True)
            votes = votes + (class_iota == first).astype(jnp.float32)
        o_ref[...] = votes * (1.0 / num_branches)


def modular_hard_voting(x_dict, weights, biases, *, pool_type="avg",
                        batch_tile=None, seq_tile=None):
    """x_dict: {key: (B, S, E)}; weights: {key: (O, E)} (torch layout); biases: {key: (O,)}."""
    if pool_type not in ("avg", "max"):
        # TODO(synk): pool_type='none' keeps the seq axis and has no clean per-sample vote here.
        raise ValueError("pool_type must be 'avg' or 'max'")

    keys = sorted(x_dict.keys())
    K = len(keys)
    xs = [x_dict[k] for k in keys]
    B, S, E = xs[0].shape
    O = weights[keys[0]].shape[0]
    dtype = xs[0].dtype
    itemsize = dtype.itemsize
    sublane = {1: 32, 2: 16}.get(itemsize, 8)

    # Lane-dense folding: fold g = 128//E consecutive seq positions into lanes
    # (a free row-major reshape) when E < 128; undone in-kernel at finalize.
    fold = 1
    if E < 128 and 128 % E == 0 and S % (128 // E) == 0:
        fold = 128 // E
    EF, Sf = E * fold, S // fold
    if fold > 1:
        xs = [x.reshape(B, Sf, EF) for x in xs]

    # Tiny per-branch params, stacked & VMEM-resident (grid-invariant block index).
    w = jnp.stack([weights[k].T for k in keys], axis=0)             # (K, E, O)
    b = jnp.stack([biases[k] for k in keys], axis=0)[:, None, :]    # (K, 1, O)
    Opad = _round_up(O, 128)

    # --- Tile sizing: budget and vmem_limit derived from the same number. ---
    vmem_limit = _vmem_capacity_bytes() * 3 // 4        # ~48 MiB v7x, ~96 MiB v5e/v6e
    vmem_limit = max(32 * 1024 * 1024, min(vmem_limit, 100 * 1024 * 1024))
    EFpad = _round_up(EF, 128)
    fixed_bytes = (2 * K * (_round_up(E, sublane) * Opad + 8 * Opad) * 4  # W, b (dbl-buffered)
                   + (4 << 20))                                           # compiler scratch headroom
    budget = max(vmem_limit - fixed_bytes, 2 << 20)
    fixed_per_row = K * EFpad * 4 + 2 * Opad * 4        # pooling acc scratch + output

    def per_row(ts):  # padding-aware VMEM bytes per batch row (double-buffered inputs)
        return 2 * K * _round_up(ts, sublane) * EFpad * itemsize + fixed_per_row

    # Sequence tile: full (folded) seq if a decent batch tile still fits, else shrink.
    if seq_tile is not None:
        TS = Sf if seq_tile >= Sf else max(sublane, (seq_tile // sublane) * sublane)
        TS = min(TS, Sf)
    else:
        min_tb = min(_round_up(B, 8), 256)
        if per_row(Sf) * min_tb <= budget:
            TS = Sf
        else:
            ts_raw = (budget // min_tb - fixed_per_row) // (2 * K * EFpad * itemsize)
            TS = min(Sf, max(sublane, (ts_raw // sublane) * sublane))

    # Batch tile: as large as the budget allows, multiple of 8 (or the full B).
    if batch_tile is not None:
        TB = B if batch_tile >= B else max(8, (batch_tile // 8) * 8)
    else:
        tb_max = max(int(budget // per_row(TS)), 8)
        TB = B if tb_max >= B else max(8, (tb_max // 8) * 8)
        if B >= 16:  # keep >= 2 batch tiles so v7x megacore shards them across both TCs
            TB = min(TB, _round_up(pl.cdiv(B, 2), 8))
    TB = min(TB, B)

    grid_b = pl.cdiv(B, TB)          # partial last block handled by Pallas (no jnp.pad pass)
    grid_s = pl.cdiv(Sf, TS)
    mask_tail = (Sf % TS) != 0       # mask OOB seq positions in the last S block

    kernel = functools.partial(
        _hard_voting_kernel, num_branches=K, pool_type=pool_type, fold=fold,
        embed_dim=E, out_dim=O, seq_folded=Sf, inv_seq=1.0 / S, mask_tail=mask_tail)

    x_spec = pl.BlockSpec((TB, TS, EF), lambda bi, si: (bi, si, 0))
    in_specs = [
        pl.BlockSpec((K, E, O), lambda bi, si: (0, 0, 0)),   # weights: resident
        pl.BlockSpec((K, 1, O), lambda bi, si: (0, 0, 0)),   # biases:  resident
    ] + [x_spec] * K
    out_spec = pl.BlockSpec((TB, Opad), lambda bi, si: (bi, 0))

    cost = pl.CostEstimate(
        flops=K * B * Sf * EF + 2 * K * B * E * O + 8 * K * B * Opad,
        transcendentals=0,
        bytes_accessed=(K * B * Sf * EF * itemsize
                        + int(w.size) * w.dtype.itemsize
                        + int(b.size) * b.dtype.itemsize
                        + B * Opad * 4),
    )

    out = pl.pallas_call(
        kernel,
        out_shape=jax.ShapeDtypeStruct((B, Opad), jnp.float32),
        grid_spec=pltpu.PrefetchScalarGridSpec(
            num_scalar_prefetch=0,
            grid=(grid_b, grid_s),
            in_specs=in_specs,
            out_specs=out_spec,
            scratch_shapes=[pltpu.VMEM((K, TB, EF), jnp.float32)],
        ),
        compiler_params=pltpu.CompilerParams(
            dimension_semantics=("parallel", "arbitrary"),
            vmem_limit_bytes=vmem_limit,
        ),
        cost_estimate=cost,
    )(w, b, *xs)

    return out[:, :O] if Opad != O else out


def _reference(x_dict, weights, biases, *, pool_type="avg"):
    """Pure-JAX reference mirroring the PyTorch forward (eval mode)."""
    keys = sorted(x_dict.keys())
    K = len(keys)
    outs = []
    for k in keys:
        xb = x_dict[k]                                              # (B, S, E)
        pooled = jnp.mean(xb, axis=1) if pool_type == "avg" else jnp.max(xb, axis=1)
        logits = pooled @ weights[k].T + biases[k]
        act = jax.nn.relu(logits)
        probs = jax.nn.softmax(act, axis=1)
        outs.append(probs)
    stacked = jnp.stack(outs, axis=1)                               # (B, K, O)
    preds = jnp.argmax(stacked, axis=2)                             # (B, K)
    O = stacked.shape[-1]
    onehot = jax.nn.one_hot(preds, O, dtype=jnp.float32)            # (B, K, O)
    return jnp.sum(onehot, axis=1) / K


def _make_inputs(key, branch_keys, B, S, E, O):
    x_dict, weights, biases = {}, {}, {}
    for name in branch_keys:
        key, kx, kw, kb = jax.random.split(key, 4)
        x_dict[name] = jax.random.normal(kx, (B, S, E), dtype=jnp.float32)
        # Deterministic synthetic Linear params (torch layout: weight (O, E), bias (O,)).
        weights[name] = jax.random.normal(kw, (O, E), dtype=jnp.float32) * (1.0 / E ** 0.5)
        biases[name] = jax.random.normal(kb, (O,), dtype=jnp.float32) * 0.01
    return key, x_dict, weights, biases


if __name__ == "__main__":
    branch_keys = ["audio", "text", "video"]
    key = jax.random.PRNGKey(0)

    # --- Small-shape check (B=2, S=8, E=32, O=16): single block, lane-folded. ---
    B, S, E, O = 2, 8, 32, 16
    key, x_dict, weights, biases = _make_inputs(key, branch_keys, B, S, E, O)

    out = jax.block_until_ready(modular_hard_voting(x_dict, weights, biases, pool_type="avg"))
    ref = _reference(x_dict, weights, biases, pool_type="avg")
    assert out.shape == (B, O)
    assert jnp.allclose(out, ref, atol=1e-6), (out, ref)
    assert jnp.allclose(jnp.sum(out, axis=1), 1.0, atol=1e-6)

    out_max = jax.block_until_ready(
        modular_hard_voting(x_dict, weights, biases, pool_type="max"))
    ref_max = _reference(x_dict, weights, biases, pool_type="max")
    assert jnp.allclose(out_max, ref_max, atol=1e-6), (out_max, ref_max)

    # --- Partial-last-block + multi-step S reduction (masked tail) check. ---
    B2, S2 = 10, 40
    key, x2, w2, b2 = _make_inputs(key, branch_keys, B2, S2, E, O)
    for ptype in ("avg", "max"):
        out2 = jax.block_until_ready(
            modular_hard_voting(x2, w2, b2, pool_type=ptype, batch_tile=8, seq_tile=8))
        ref2 = _reference(x2, w2, b2, pool_type=ptype)
        assert out2.shape == (B2, O)
        assert jnp.allclose(out2, ref2, atol=1e-6), (ptype, out2, ref2)

    print("KERNEL_OK")
</pallas_src>

<mosaic_0001>
module attributes {stable_mosaic.version = 11 : i64} {
  func.func @_hard_voting_kernel(%arg0: i32, %arg1: i32, %arg2: memref<3x32x16xf32, #tpu.memory_space<vmem>>, %arg3: memref<3x1x16xf32, #tpu.memory_space<vmem>>, %arg4: memref<2x2x128xf32, #tpu.memory_space<vmem>>, %arg5: memref<2x2x128xf32, #tpu.memory_space<vmem>>, %arg6: memref<2x2x128xf32, #tpu.memory_space<vmem>>, %arg7: memref<2x128xf32, #tpu.memory_space<vmem>>, %arg8: memref<3x2x128xf32, #tpu.memory_space<vmem>>) attributes {dimension_semantics = [#tpu.dimension_semantics<parallel>, #tpu.dimension_semantics<arbitrary>], iteration_bounds = array<i64: 1, 1>, scalar_prefetch = 0 : i64, scratch_operands = 1 : i64, tpu.core_type = #tpu.core_type<tc>, window_params = [{pipeline_mode = #tpu.pipeline_mode<synchronous>, transform_indices = @transform_0, window_bounds = array<i64: 3, 32, 16>}, {pipeline_mode = #tpu.pipeline_mode<synchronous>, transform_indices = @transform_1, window_bounds = array<i64: 3, 1, 16>}, {transform_indices = @transform_2, window_bounds = array<i64: 2, 2, 128>}, {transform_indices = @transform_3, window_bounds = array<i64: 2, 2, 128>}, {transform_indices = @transform_4, window_bounds = array<i64: 2, 2, 128>}, {transform_indices = @transform_5, window_bounds = array<i64: 2, 128>}]} {
    %c0_i32 = arith.constant 0 : i32
    %0 = arith.cmpi eq, %arg1, %c0_i32 : i32
    %1 = arith.extui %0 : i1 to i32
    %c0_i32_0 = arith.constant 0 : i32
    %2 = arith.cmpi ne, %1, %c0_i32_0 : i32
    scf.if %2 {
      %cst_29 = arith.constant 0.000000e+00 : f32
      %30 = vector.broadcast %cst_29 : f32 to vector<3x2x128xf32>
      %c0_30 = arith.constant 0 : index
      %c0_31 = arith.constant 0 : index
      %c0_32 = arith.constant 0 : index
      %31 = vector.load %arg8[%c0_30, %c0_31, %c0_32] : memref<3x2x128xf32, #tpu.memory_space<vmem>>, vector<3x2x128xf32>
      tpu.vector_store %arg8[%c0_30, %c0_31, %c0_32], %30 {strides = array<i32>} : memref<3x2x128xf32, #tpu.memory_space<vmem>>, vector<3x2x128xf32>,
    } else {
    }
    %c0 = arith.constant 0 : index
    %c0_1 = arith.constant 0 : index
    %c0_2 = arith.constant 0 : index
    %3 = vector.load %arg4[%c0, %c0_1, %c0_2] : memref<2x2x128xf32, #tpu.memory_space<vmem>>, vector<2x2x128xf32>
    %c0_3 = arith.constant 0 : index
    %c0_4 = arith.constant 0 : index
    %c0_5 = arith.constant 0 : index
    %4 = vector.load %arg8[%c0_3, %c0_4, %c0_5] : memref<3x2x128xf32, #tpu.memory_space<vmem>>, vector<1x2x128xf32>
    %5 = vector.shape_cast %4 : vector<1x2x128xf32> to vector<2x128xf32>
    %cst = arith.constant dense<0.000000e+00> : vector<2x128xf32>
    %6 = vector.multi_reduction <add>, %3, %cst [1] : vector<2x2x128xf32> to vector<2x128xf32>
    %7 = arith.addf %5, %6 : vector<2x128xf32>
    %c0_6 = arith.constant 0 : index
    %c0_7 = arith.constant 0 : index
    %c0_8 = arith.constant 0 : index
    %8 = vector.load %arg8[%c0_6, %c0_7, %c0_8] : memref<3x2x128xf32, #tpu.memory_space<vmem>>, vector<1x2x128xf32>
    %9 = vector.shape_cast %8 : vector<1x2x128xf32> to vector<2x128xf32>
    %10 = vector.shape_cast %7 : vector<2x128xf32> to vector<1x2x128xf32>
    tpu.vector_store %arg8[%c0_6, %c0_7, %c0_8], %10 {strides = array<i32>} : memref<3x2x128xf32, #tpu.memory_space<vmem>>, vector<1x2x128xf32>,
    %c0_9 = arith.constant 0 : index
    %c0_10 = arith.constant 0 : index
    %c0_11 = arith.constant 0 : index
    %11 = vector.load %arg5[%c0_9, %c0_10, %c0_11] : memref<2x2x128xf32, #tpu.memory_space<vmem>>, vector<2x2x128xf32>
    %c1 = arith.constant 1 : index
    %c0_12 = arith.constant 0 : index
    %c0_13 = arith.constant 0 : index
    %12 = vector.load %arg8[%c1, %c0_12, %c0_13] : memref<3x2x128xf32, #tpu.memory_space<vmem>>, vector<1x2x128xf32>
    %13 = vector.shape_cast %12 : vector<1x2x128xf32> to vector<2x128xf32>
    %cst_14 = arith.constant dense<0.000000e+00> : vector<2x128xf32>
    %14 = vector.multi_reduction <add>, %11, %cst_14 [1] : vector<2x2x128xf32> to vector<2x128xf32>
    %15 = arith.addf %13, %14 : vector<2x128xf32>
    %c1_15 = arith.constant 1 : index
    %c0_16 = arith.constant 0 : index
    %c0_17 = arith.constant 0 : index
    %16 = vector.load %arg8[%c1_15, %c0_16, %c0_17] : memref<3x2x128xf32, #tpu.memory_space<vmem>>, vector<1x2x128xf32>
    %17 = vector.shape_cast %16 : vector<1x2x128xf32> to vector<2x128xf32>
    %18 = vector.shape_cast %15 : vector<2x128xf32> to vector<1x2x128xf32>
    tpu.vector_store %arg8[%c1_15, %c0_16, %c0_17], %18 {strides = array<i32>} : memref<3x2x128xf32, #tpu.memory_space<vmem>>, vector<1x2x128xf32>,
    %c0_18 = arith.constant 0 : index
    %c0_19 = arith.constant 0 : index
    %c0_20 = arith.constant 0 : index
    %19 = vector.load %arg6[%c0_18, %c0_19, %c0_20] : memref<2x2x128xf32, #tpu.memory_space<vmem>>, vector<2x2x128xf32>
    %c2 = arith.constant 2 : index
    %c0_21 = arith.constant 0 : index
    %c0_22 = arith.constant 0 : index
    %20 = vector.load %arg8[%c2, %c0_21, %c0_22] : memref<3x2x128xf32, #tpu.memory_space<vmem>>, vector<1x2x128xf32>
    %21 = vector.shape_cast %20 : vector<1x2x128xf32> to vector<2x128xf32>
    %cst_23 = arith.constant dense<0.000000e+00> : vector<2x128xf32>
    %22 = vector.multi_reduction <add>, %19, %cst_23 [1] : vector<2x2x128xf32> to vector<2x128xf32>
    %23 = arith.addf %21, %22 : vector<2x128xf32>
    %c2_24 = arith.constant 2 : index
    %c0_25 = arith.constant 0 : index
    %c0_26 = arith.constant 0 : index
    %24 = vector.load %arg8[%c2_24, %c0_25, %c0_26] : memref<3x2x128xf32, #tpu.memory_space<vmem>>, vector<1x2x128xf32>
    %25 = vector.shape_cast %24 : vector<1x2x128xf32> to vector<2x128xf32>
    %26 = vector.shape_cast %23 : vector<2x128xf32> to vector<1x2x128xf32>
    tpu.vector_store %arg8[%c2_24, %c0_25, %c0_26], %26 {strides = array<i32>} : memref<3x2x128xf32, #tpu.memory_space<vmem>>, vector<1x2x128xf32>,
    %c0_i32_27 = arith.constant 0 : i32
    %27 = arith.cmpi eq, %arg1, %c0_i32_27 : i32
    %28 = arith.extui %27 : i1 to i32
    %c0_i32_28 = arith.constant 0 : i32
    %29 = arith.cmpi ne, %28, %c0_i32_28 : i32
    scf.if %29 {
      %30 = tpu.iota {dimensions = array<i32: 1>} : vector<2x128xi32>
      %cst_29 = arith.constant 0.000000e+00 : f32
      %31 = vector.broadcast %cst_29 : f32 to vector<2x128xf32>
      %c0_30 = arith.constant 0 : index
      %c0_31 = arith.constant 0 : index
      %c0_32 = arith.constant 0 : index
      %32 = vector.load %arg8[%c0_30, %c0_31, %c0_32] : memref<3x2x128xf32, #tpu.memory_space<vmem>>, vector<1x2x128xf32>
      %33 = vector.shape_cast %32 : vector<1x2x128xf32> to vector<2x128xf32>
      %34 = vector.shape_cast %33 : vector<2x128xf32> to vector<2x4x32xf32>
      %cst_33 = arith.constant dense<0.000000e+00> : vector<2x32xf32>
      %35 = vector.multi_reduction <add>, %34, %cst_33 [1] : vector<2x4x32xf32> to vector<2x32xf32>
      %cst_34 = arith.constant 1.250000e-01 : f32
      %36 = vector.broadcast %cst_34 : f32 to vector<2x32xf32>
      %37 = arith.mulf %35, %36 : vector<2x32xf32>
      %c0_35 = arith.constant 0 : index
      %c0_36 = arith.constant 0 : index
      %c0_37 = arith.constant 0 : index
      %38 = vector.load %arg2[%c0_35, %c0_36, %c0_37] : memref<3x32x16xf32, #tpu.memory_space<vmem>>, vector<1x32x16xf32>
      %39 = vector.shape_cast %38 : vector<1x32x16xf32> to vector<32x16xf32>
      %c0_38 = arith.constant 0 : index
      %c0_39 = arith.constant 0 : index
      %c0_40 = arith.constant 0 : index
      %40 = vector.load %arg3[%c0_38, %c0_39, %c0_40] : memref<3x1x16xf32, #tpu.memory_space<vmem>>, vector<1x1x16xf32>
      %41 = vector.shape_cast %40 : vector<1x1x16xf32> to vector<1x16xf32>
      %cst_41 = arith.constant dense<0.000000e+00> : vector<2x16xf32>
      %42 = tpu.matmul %37, %39, %cst_41 {dimension_numbers = #tpu.dot_dimension_numbers<[1], [0], [0], [1], [0, 0, 1, 1], [], []>} : vector<2x32xf32>, vector<32x16xf32>, vector<2x16xf32> -> vector<2x16xf32>
      %43 = vector.broadcast %41 : vector<1x16xf32> to vector<2x16xf32>
      %44 = arith.addf %42, %43 : vector<2x16xf32>
      %cst_42 = arith.constant 0.000000e+00 : f32
      %45 = vector.broadcast %cst_42 : f32 to vector<2x16xf32>
      %46 = arith.maximumf %44, %45 : vector<2x16xf32>
      %cst_43 = arith.constant dense<0xFF800000> : vector<2xf32>
      %47 = vector.multi_reduction <maximumf>, %46, %cst_43 [1] : vector<2x16xf32> to vector<2xf32>
      %48 = vector.shape_cast %47 : vector<2xf32> to vector<2x1xf32>
      %49 = tpu.iota {dimensions = array<i32: 1>} : vector<2x16xi32>
      %50 = vector.broadcast %48 : vector<2x1xf32> to vector<2x16xf32>
      %51 = arith.cmpf oeq, %46, %50 : vector<2x16xf32>
      %c16_i32 = arith.constant 16 : i32
      %52 = vector.broadcast %c16_i32 : i32 to vector<2x16xi32>
      %53 = arith.select %51, %49, %52 : vector<2x16xi1>, vector<2x16xi32>
      %cst_44 = arith.constant dense<2147483647> : vector<2xi32>
      %54 = vector.multi_reduction <minsi>, %53, %cst_44 [1] : vector<2x16xi32> to vector<2xi32>
      %55 = vector.shape_cast %54 : vector<2xi32> to vector<2x1xi32>
      %56 = vector.broadcast %55 : vector<2x1xi32> to vector<2x128xi32>
      %57 = arith.cmpi eq, %30, %56 : vector<2x128xi32>
      %58 = arith.extui %57 : vector<2x128xi1> to vector<2x128xi32>
      %59 = arith.sitofp %58 : vector<2x128xi32> to vector<2x128xf32>
      %60 = arith.addf %31, %59 : vector<2x128xf32>
      %c1_45 = arith.constant 1 : index
      %c0_46 = arith.constant 0 : index
      %c0_47 = arith.constant 0 : index
      %61 = vector.load %arg8[%c1_45, %c0_46, %c0_47] : memref<3x2x128xf32, #tpu.memory_space<vmem>>, vector<1x2x128xf32>
      %62 = vector.shape_cast %61 : vector<1x2x128xf32> to vector<2x128xf32>
      %63 = vector.shape_cast %62 : vector<2x128xf32> to vector<2x4x32xf32>
      %cst_48 = arith.constant dense<0.000000e+00> : vector<2x32xf32>
      %64 = vector.multi_reduction <add>, %63, %cst_48 [1] : vector<2x4x32xf32> to vector<2x32xf32>
      %cst_49 = arith.constant 1.250000e-01 : f32
      %65 = vector.broadcast %cst_49 : f32 to vector<2x32xf32>
      %66 = arith.mulf %64, %65 : vector<2x32xf32>
      %c1_50 = arith.constant 1 : index
      %c0_51 = arith.constant 0 : index
      %c0_52 = arith.constant 0 : index
      %67 = vector.load %arg2[%c1_50, %c0_51, %c0_52] : memref<3x32x16xf32, #tpu.memory_space<vmem>>, vector<1x32x16xf32>
      %68 = vector.shape_cast %67 : vector<1x32x16xf32> to vector<32x16xf32>
      %c1_53 = arith.constant 1 : index
      %c0_54 = arith.constant 0 : index
      %c0_55 = arith.constant 0 : index
      %69 = vector.load %arg3[%c1_53, %c0_54, %c0_55] : memref<3x1x16xf32, #tpu.memory_space<vmem>>, vector<1x1x16xf32>
      %70 = vector.shape_cast %69 : vector<1x1x16xf32> to vector<1x16xf32>
      %cst_56 = arith.constant dense<0.000000e+00> : vector<2x16xf32>
      %71 = tpu.matmul %66, %68, %cst_56 {dimension_numbers = #tpu.dot_dimension_numbers<[1], [0], [0], [1], [0, 0, 1, 1], [], []>} : vector<2x32xf32>, vector<32x16xf32>, vector<2x16xf32> -> vector<2x16xf32>
      %72 = vector.broadcast %70 : vector<1x16xf32> to vector<2x16xf32>
      %73 = arith.addf %71, %72 : vector<2x16xf32>
      %cst_57 = arith.constant 0.000000e+00 : f32
      %74 = vector.broadcast %cst_57 : f32 to vector<2x16xf32>
      %75 = arith.maximumf %73, %74 : vector<2x16xf32>
      %cst_58 = arith.constant dense<0xFF800000> : vector<2xf32>
      %76 = vector.multi_reduction <maximumf>, %75, %cst_58 [1] : vector<2x16xf32> to vector<2xf32>
      %77 = vector.shape_cast %76 : vector<2xf32> to vector<2x1xf32>
      %78 = tpu.iota {dimensions = array<i32: 1>} : vector<2x16xi32>
      %79 = vector.broadcast %77 : vector<2x1xf32> to vector<2x16xf32>
      %80 = arith.cmpf oeq, %75, %79 : vector<2x16xf32>
      %c16_i32_59 = arith.constant 16 : i32
      %81 = vector.broadcast %c16_i32_59 : i32 to vector<2x16xi32>
      %82 = arith.select %80, %78, %81 : vector<2x16xi1>, vector<2x16xi32>
      %cst_60 = arith.constant dense<2147483647> : vector<2xi32>
      %83 = vector.multi_reduction <minsi>, %82, %cst_60 [1] : vector<2x16xi32> to vector<2xi32>
      %84 = vector.shape_cast %83 : vector<2xi32> to vector<2x1xi32>
      %85 = vector.broadcast %84 : vector<2x1xi32> to vector<2x128xi32>
      %86 = arith.cmpi eq, %30, %85 : vector<2x128xi32>
      %87 = arith.extui %86 : vector<2x128xi1> to vector<2x128xi32>
      %88 = arith.sitofp %87 : vector<2x128xi32> to vector<2x128xf32>
      %89 = arith.addf %60, %88 : vector<2x128xf32>
      %c2_61 = arith.constant 2 : index
      %c0_62 = arith.constant 0 : index
      %c0_63 = arith.constant 0 : index
      %90 = vector.load %arg8[%c2_61, %c0_62, %c0_63] : memref<3x2x128xf32, #tpu.memory_space<vmem>>, vector<1x2x128xf32>
      %91 = vector.shape_cast %90 : vector<1x2x128xf32> to vector<2x128xf32>
      %92 = vector.shape_cast %91 : vector<2x128xf32> to vector<2x4x32xf32>
      %cst_64 = arith.constant dense<0.000000e+00> : vector<2x32xf32>
      %93 = vector.multi_reduction <add>, %92, %cst_64 [1] : vector<2x4x32xf32> to vector<2x32xf32>
      %cst_65 = arith.constant 1.250000e-01 : f32
      %94 = vector.broadcast %cst_65 : f32 to vector<2x32xf32>
      %95 = arith.mulf %93, %94 : vector<2x32xf32>
      %c2_66 = arith.constant 2 : index
      %c0_67 = arith.constant 0 : index
      %c0_68 = arith.constant 0 : index
      %96 = vector.load %arg2[%c2_66, %c0_67, %c0_68] : memref<3x32x16xf32, #tpu.memory_space<vmem>>, vector<1x32x16xf32>
      %97 = vector.shape_cast %96 : vector<1x32x16xf32> to vector<32x16xf32>
      %c2_69 = arith.constant 2 : index
      %c0_70 = arith.constant 0 : index
      %c0_71 = arith.constant 0 : index
      %98 = vector.load %arg3[%c2_69, %c0_70, %c0_71] : memref<3x1x16xf32, #tpu.memory_space<vmem>>, vector<1x1x16xf32>
      %99 = vector.shape_cast %98 : vector<1x1x16xf32> to vector<1x16xf32>
      %cst_72 = arith.constant dense<0.000000e+00> : vector<2x16xf32>
      %100 = tpu.matmul %95, %97, %cst_72 {dimension_numbers = #tpu.dot_dimension_numbers<[1], [0], [0], [1], [0, 0, 1, 1], [], []>} : vector<2x32xf32>, vector<32x16xf32>, vector<2x16xf32> -> vector<2x16xf32>
      %101 = vector.broadcast %99 : vector<1x16xf32> to vector<2x16xf32>
      %102 = arith.addf %100, %101 : vector<2x16xf32>
      %cst_73 = arith.constant 0.000000e+00 : f32
      %103 = vector.broadcast %cst_73 : f32 to vector<2x16xf32>
      %104 = arith.maximumf %102, %103 : vector<2x16xf32>
      %cst_74 = arith.constant dense<0xFF800000> : vector<2xf32>
      %105 = vector.multi_reduction <maximumf>, %104, %cst_74 [1] : vector<2x16xf32> to vector<2xf32>
      %106 = vector.shape_cast %105 : vector<2xf32> to vector<2x1xf32>
      %107 = tpu.iota {dimensions = array<i32: 1>} : vector<2x16xi32>
      %108 = vector.broadcast %106 : vector<2x1xf32> to vector<2x16xf32>
      %109 = arith.cmpf oeq, %104, %108 : vector<2x16xf32>
      %c16_i32_75 = arith.constant 16 : i32
      %110 = vector.broadcast %c16_i32_75 : i32 to vector<2x16xi32>
      %111 = arith.select %109, %107, %110 : vector<2x16xi1>, vector<2x16xi32>
      %cst_76 = arith.constant dense<2147483647> : vector<2xi32>
      %112 = vector.multi_reduction <minsi>, %111, %cst_76 [1] : vector<2x16xi32> to vector<2xi32>
      %113 = vector.shape_cast %112 : vector<2xi32> to vector<2x1xi32>
      %114 = vector.broadcast %113 : vector<2x1xi32> to vector<2x128xi32>
      %115 = arith.cmpi eq, %30, %114 : vector<2x128xi32>
      %116 = arith.extui %115 : vector<2x128xi1> to vector<2x128xi32>
      %117 = arith.sitofp %116 : vector<2x128xi32> to vector<2x128xf32>
      %118 = arith.addf %89, %117 : vector<2x128xf32>
      %cst_77 = arith.constant 0.333333343 : f32
      %119 = vector.broadcast %cst_77 : f32 to vector<2x128xf32>
      %120 = arith.mulf %118, %119 : vector<2x128xf32>
      %c0_78 = arith.constant 0 : index
      %c0_79 = arith.constant 0 : index
      %121 = vector.load %arg7[%c0_78, %c0_79] : memref<2x128xf32, #tpu.memory_space<vmem>>, vector<2x128xf32>
      tpu.vector_store %arg7[%c0_78, %c0_79], %120 {strides = array<i32>} : memref<2x128xf32, #tpu.memory_space<vmem>>, vector<2x128xf32>,
    } else {
    }
    return
  }
  func.func @transform_0(%arg0: i32, %arg1: i32) -> (i32, i32, i32) {
    %c0_i32 = arith.constant 0 : i32
    %c0_i32_0 = arith.constant 0 : i32
    %c0_i32_1 = arith.constant 0 : i32
    %c0_i32_2 = arith.constant 0 : i32
    return %c0_i32, %c0_i32_0, %c0_i32_1 : i32, i32, i32
  }
  func.func @transform_1(%arg0: i32, %arg1: i32) -> (i32, i32, i32) {
    %c0_i32 = arith.constant 0 : i32
    %c0_i32_0 = arith.constant 0 : i32
    %c0_i32_1 = arith.constant 0 : i32
    %c0_i32_2 = arith.constant 0 : i32
    return %c0_i32, %c0_i32_0, %c0_i32_1 : i32, i32, i32
  }
  func.func @transform_2(%arg0: i32, %arg1: i32) -> (i32, i32, i32) {
    %c0_i32 = arith.constant 0 : i32
    %c0_i32_0 = arith.constant 0 : i32
    return %arg0, %arg1, %c0_i32 : i32, i32, i32
  }
  func.func @transform_3(%arg0: i32, %arg1: i32) -> (i32, i32, i32) {
    %c0_i32 = arith.constant 0 : i32
    %c0_i32_0 = arith.constant 0 : i32
    return %arg0, %arg1, %c0_i32 : i32, i32, i32
  }
  func.func @transform_4(%arg0: i32, %arg1: i32) -> (i32, i32, i32) {
    %c0_i32 = arith.constant 0 : i32
    %c0_i32_0 = arith.constant 0 : i32
    return %arg0, %arg1, %c0_i32 : i32, i32, i32
  }
  func.func @transform_5(%arg0: i32, %arg1: i32) -> (i32, i32) {
    %c0_i32 = arith.constant 0 : i32
    %c0_i32_0 = arith.constant 0 : i32
    return %arg0, %c0_i32 : i32, i32
  }
}

</mosaic_0001>

<bundles_post_ra>
// kernel: tpu_custom_call.1
= control target key start
LH: loop header
LB: loop body
LE: loop exit
PB: predicated region body
PF: predicated region fallthrough
CT: control target
= control target key end

     0   :  { %vm31_vm0 = vcmask 1041408   ;;  %v736_v2 = vmov 0.0   ;;  %s909_s0 = inlined_call_operand.vmem [shape: f32[3,32,16], index: 0, kind: input, shape index: {}]   ;;  %s910_s1 = inlined_call_operand.vmem [shape: f32[3,1,16], index: 1, kind: input, shape index: {}]   ;;  %s911_s2 = inlined_call_operand.vmem [shape: f32[2,2,128], index: 2, kind: input, shape index: {}]   ;;  %s912_s3 = inlined_call_operand.vmem [shape: f32[2,2,128], index: 3, kind: input, shape index: {}]   ;;  %s913_s4 = inlined_call_operand.vmem [shape: f32[2,2,128], index: 4, kind: input, shape index: {}]   ;;  %s914_s5 = inlined_call_operand.hbm [shape: f32[2,128], index: 5, kind: output, shape index: {}]  }
   0x1   :  { %v28_v0 = vld [vmem:[%s911_s2] sm:$0x3]  ;;  %v29_v1 = vld [vmem:[%s911_s2 + $0x2] sm:$0x3]  ;;  %25 = vst [vmem:[#allocation2] sm:$0x3] %v736_v2 }
   0x2   :  { %v32_v3 = vsel %vm31_vm0, %v28_v0, 0.0  ;;  %v39_v4 = vsel %vm31_vm0, %v29_v1, 0.0  ;;  %26 = vst [vmem:[#allocation2 + $0x2] sm:$0x3] %v736_v2  ;;  %27 = vst [vmem:[#allocation2 + $0x4] sm:$0x3] %v736_v2 }
   0x3   :  { %v33_v5 = vrot.slane %v32_v3, 4  ;;  %v40_v6 = vrot.slane %v39_v4, 4  ;;  %v53_v7 = vld [vmem:[%s912_s3] sm:$0x3]  ;;  %v54_v8 = vld [vmem:[%s912_s3 + $0x2] sm:$0x3] }
   0x4   :  { %v57_v9 = vsel %vm31_vm0, %v53_v7, 0.0  ;;  %v64_v10 = vsel %vm31_vm0, %v54_v8, 0.0  ;;  %v77_v11 = vld [vmem:[%s913_s4] sm:$0x3]  ;;  %v78_v16 = vld [vmem:[%s913_s4 + $0x2] sm:$0x3] }
   0x5   :  { %v34_v12 = vadd.f32 %v33_v5, %v32_v3  ;;  %v41_v13 = vadd.f32 %v40_v6, %v39_v4  ;;  %v58_v14 = vrot.slane %v57_v9, 4  ;;  %v65_v15 = vrot.slane %v64_v10, 4 }
   0x6   :  { %10 = vsyncpa [#allocation4], 0  ;;  %v81_v17 = vsel %vm31_vm0, %v77_v11, 0.0  ;;  %v88_v18 = vsel %vm31_vm0, %v78_v16, 0.0  ;;  %vm48_vm1 = vcmask 1041409   ;;  %s737_s3 = smov 32   ;;  %v104_v11 = vlaneseq }
   0x7   :  { %v35_v19 = vrot.slane %v34_v12, 2  ;;  %v42_v20 = vrot.slane %v41_v13, 2  ;;  %v59_v21 = vadd.f32 %v58_v14, %v57_v9  ;;  %v66_v22 = vadd.f32 %v65_v15, %v64_v10  ;;  %s738_s4 = smov 96   ;;  %s739_s29 = smov 64   ;;  %v159_v60 = vld [vmem:[%s909_s0] sm:$0xff]  ;;  %v160_v61 = vld [vmem:[%s909_s0 + $0x8] sm:$0xff] }
   0x8   :  { %v82_v23 = vrot.slane %v81_v17, 4  ;;  %v89_v24 = vrot.slane %v88_v18, 4  ;;  %v30_v37 = vld [vmem:[#allocation2] sm:$0x3]  ;;  %v686_v62 = vpack.c.bf16 %v160_v61, %v159_v60  ;;  %v740_v0 = vmov 0.0|0.0   ;;  %v161_v1 = vld [vmem:[%s909_s0 + $0x10] sm:$0xff] }
   0x9   :  { %v36_v25 = vadd.f32 %v35_v19, %v34_v12  ;;  %v43_v26 = vadd.f32 %v42_v20, %v41_v13  ;;  %v60_v27 = vrot.slane %v59_v21, 2  ;;  %v67_v28 = vrot.slane %v66_v22, 2  ;;  %v56_v45 = vld [vmem:[#allocation2 + $0x2] sm:$0x3]  ;;  %v80_v53 = vld [vmem:[#allocation2 + $0x4] sm:$0x3]  ;;  %685 = vmatprep.subr.bf16.mxu0 %v740_v0  ;;  %691 = vmatprep.subr.bf16.mxu1 %v740_v0 }
   0xa   :  { %v83_v29 = vadd.f32 %v82_v23, %v81_v17  ;;  %v90_v30 = vadd.f32 %v89_v24, %v88_v18  ;;  %687 = vmatpush3.bf16.msra.mxu0 %v686_v62  ;;  %v162_v3 = vld [vmem:[%s909_s0 + $0x18] sm:$0xff]  ;;  %v621_v4 = vld [vmem:[%s909_s0 + $0x20] sm:$0xff]  ;;  %v622_v6 = vld [vmem:[%s909_s0 + $0x28] sm:$0xff]  ;;  %vm741_vm2 = vmmov 0   ;;  %v742_v12 = vmov 1983009808  }
   0xb   :  { %v37_v31 = vrot.slane %v36_v25, 1  ;;  %v44_v32 = vrot.slane %v43_v26, 1  ;;  %v61_v33 = vadd.f32 %v60_v27, %v59_v21  ;;  %v68_v34 = vadd.f32 %v67_v28, %v66_v22  ;;  %688 = vmatprep.subr.bf16.mxu0 %v740_v0  ;;  %v623_v8 = vld [vmem:[%s909_s0 + $0x30] sm:$0xff]  ;;  %v624_v9 = vld [vmem:[%s909_s0 + $0x38] sm:$0xff]  ;;  %660 = vmatprep.mubr.msk.f32.mxu0 %vm741_vm2, %v736_v2 }
   0xc   :  { %v84_v35 = vrot.slane %v83_v29, 2  ;;  %v91_v36 = vrot.slane %v90_v30, 2  ;;  %v689_v5 = vpack.c.bf16 %v162_v3, %v161_v1  ;;  %v692_v7 = vpack.c.bf16 %v622_v6, %v621_v4  ;;  %671 = vmatprep.mubr.msk.f32.mxu1 %vm741_vm2, %v736_v2 }
   0xd   :  { %v38_v38 = vadd.f32 %v37_v31, %v36_v25  ;;  %v45_v39 = vadd.f32 %v44_v32, %v43_v26  ;;  %v62_v40 = vrot.slane %v61_v33, 1  ;;  %v69_v41 = vrot.slane %v68_v34, 1 }
   0xe   :  { %v85_v42 = vadd.f32 %v84_v35, %v83_v29  ;;  %v92_v43 = vadd.f32 %v91_v36, %v90_v30  ;;  %690 = vmatpush3.bf16.msra.mxu0 %v689_v5  ;;  %693 = vmatpush3.bf16.msra.mxu1 %v692_v7  ;;  %v695_v10 = vpack.c.bf16 %v624_v9, %v623_v8  ;;  %v119_v13 = vunpack.c.l.s4 %v742_v12  ;;  %v630_v12 = vld [vmem:[%s909_s0 + $0x48] sm:$0xff] }
   0xf   :  { %v49_v44 = vsel %vm48_vm1, %v45_v39, %v38_v38  ;;  %v63_v46 = vadd.f32 %v62_v40, %v61_v33  ;;  %v70_v47 = vadd.f32 %v69_v41, %v68_v34  ;;  %697 = vmatprep.subr.bf16.mxu0 %v740_v0  ;;  %694 = vmatprep.subr.bf16.mxu1 %v740_v0  ;;  %v122_v15 = vshrl.u32 %v104_v11, 7 }
  0x10   :  { %v51_v48 = vadd.f32 %v49_v44, %v30_v37  ;;  %v86_v49 = vrot.slane %v85_v42, 1  ;;  %v93_v50 = vrot.slane %v92_v43, 1  ;;  %v120_v14 = vunpack.c.0.s8 %v119_v13 }
  0x11   :  { %v73_v51 = vsel %vm48_vm1, %v70_v47, %v63_v46  ;;  %v743_v16 = vmov 1934713408   ;;  %vm142_vm3 = vcmask 257024   ;;  %vm173_vm4 = vcmask 261120  }
  0x12   :  { %52 = vst [vmem:[#allocation2] sm:$0x3] %v51_v48  ;;  %v75_v52 = vadd.f32 %v73_v51, %v56_v45  ;;  %v87_v54 = vadd.f32 %v86_v49, %v85_v42  ;;  %v94_v55 = vadd.f32 %v93_v50, %v92_v43  ;;  %696 = vmatpush3.bf16.msra.mxu1 %v695_v10  ;;  %v135_v17 = vunpack.c.l.s4 %v743_v16  ;;  %v629_v10 = vld [vmem:[%s909_s0 + $0x40] sm:$0xff] }
  0x13   :  { %v123_v20 = vsub.s32 %v120_v14, %v122_v15  ;;  %vm247_vm5 = vcmask 123904  }
  0x14   :  { %76 = vst [vmem:[#allocation2 + $0x2] sm:$0x3] %v75_v52  ;;  %v97_v56 = vsel %vm48_vm1, %v94_v55, %v87_v54  ;;  %v136_v22 = vunpack.c.0.s8 %v135_v17 }
  0x15   :  { %v99_v57 = vadd.f32 %v97_v56, %v80_v53 }
  0x16   :  { %v139_v27 = vsub.s32 %v136_v22, %v122_v15 }
  0x17   :  { %100 = vst [vmem:[#allocation2 + $0x4] sm:$0x3] %v99_v57 }
  0x19   :  { %v106_v58 = vld [vmem:[#allocation2] sm:$0x3] }
  0x1a   :  { %114 = vrot.lane.b32.xlu1 %v106_v58, %s737_s3  ;;  %108 = vrot.lane.b32.xlu0 %v106_v58, %s738_s4 }
  0x1b   :  { %v272_v59 = vld [vmem:[#allocation2 + $0x2] sm:$0x3] }
  0x1e   :  { %274 = vrot.lane.b32.xlu1 %v272_v59, %s738_s4  ;;  %111 = vrot.lane.b32.xlu0 %v106_v58, %s739_s29  ;;  %v813_v63 = vld [vmem:[#allocation2 + $0x4] sm:$0x3] }
  0x22   :  { %280 = vrot.lane.b32.xlu1 %v272_v59, %s737_s3  ;;  %277 = vrot.lane.b32.xlu0 %v272_v59, %s739_s29 }
  0x26   :  { %439 = vrot.lane.b32.xlu0 %v813_v63, %s738_s4  ;;  %442 = vrot.lane.b32.xlu1 %v813_v63, %s739_s29 }
  0x2a   :  { %445 = vrot.lane.b32.xlu0 %v813_v63, %s737_s3 }
  0x8c   :  { %v115_v18 = vpop.permute.xlu1 %114  ;;  %v109_v19 = vpop.permute.xlu0 %108 }
  0x8d   :  { %v125_v21 = vcombine.low %v109_v19, %v115_v18 }
  0x8f   :  { %v132_v26 = vrot.slane %v125_v21, %v123_v20 }
  0x90   :  { %v275_v23 = vpop.permute.xlu1 %274  ;;  %v112_v24 = vpop.permute.xlu0 %111 }
  0x91   :  { %v117_v25 = vcombine.low %v106_v58, %v112_v24 }
  0x93   :  { %v124_v28 = vrot.slane %v117_v25, %v123_v20 }
  0x94   :  { %v281_v29 = vpop.permute.xlu1 %280  ;;  %v278_v30 = vpop.permute.xlu0 %277 }
  0x95   :  { %v133_v31 = vcombine.low %v124_v28, %v132_v26  ;;  %v291_v32 = vcombine.low %v275_v23, %v281_v29  ;;  %v283_v33 = vcombine.low %v272_v59, %v278_v30  ;;  %v632_v28 = vld [vmem:[%s909_s0 + $0x58] sm:$0xff] }
  0x97   :  { %v140_v34 = vrot.slane %v133_v31, %v139_v27  ;;  %v298_v35 = vrot.slane %v291_v32, %v123_v20  ;;  %v290_v36 = vrot.slane %v283_v33, %v123_v20 }
  0x98   :  { %v440_v37 = vpop.permute.xlu0 %439  ;;  %v443_v38 = vpop.permute.xlu1 %442 }
  0x99   :  { %v141_v39 = vcombine.high %v140_v34, %v736_v2  ;;  %v143_v40 = vsel %vm142_vm3, %v140_v34, 0.0  ;;  %v299_v41 = vcombine.low %v290_v36, %v298_v35  ;;  %v448_v42 = vcombine.low %v813_v63, %v443_v38 }
  0x9a   :  { %v144_v43 = vrot.slane %v143_v40, 4 }
  0x9b   :  { %v150_v44 = vsel %vm142_vm3, %v141_v39, 0.0  ;;  %v306_v45 = vrot.slane %v299_v41, %v139_v27  ;;  %v455_v51 = vrot.slane %v448_v42, %v123_v20 }
  0x9c   :  { %v145_v46 = vadd.f32 %v144_v43, %v143_v40  ;;  %v151_v47 = vrot.slane %v150_v44, 4  ;;  %v446_v48 = vpop.permute.xlu0 %445 }
  0x9d   :  { %v307_v49 = vcombine.high %v306_v45, %v736_v2  ;;  %v308_v50 = vsel %vm142_vm3, %v306_v45, 0.0  ;;  %v456_v52 = vcombine.low %v440_v37, %v446_v48 }
  0x9e   :  { %v146_v53 = vrot.slane %v145_v46, 2  ;;  %v152_v54 = vadd.f32 %v151_v47, %v150_v44  ;;  %v309_v55 = vrot.slane %v308_v50, 4 }
  0x9f   :  { %v315_v56 = vsel %vm142_vm3, %v307_v49, 0.0  ;;  %v463_v57 = vrot.slane %v456_v52, %v123_v20  ;;  %v698_v20 = vpack.c.bf16 %v630_v12, %v629_v10 }
  0xa0   :  { %v310_v58 = vadd.f32 %v309_v55, %v308_v50  ;;  %v316_v59 = vrot.slane %v315_v56, 4  ;;  %v147_v60 = vadd.f32 %v146_v53, %v145_v46  ;;  %v153_v61 = vrot.slane %v152_v54, 2 }
  0xa1   :  { %v464_v62 = vcombine.low %v455_v51, %v463_v57  ;;  %v626_v51 = vld [vmem:[%s910_s1 + $0x1] ss:$0 sm:$0xff] }
  0xa2   :  { %v311_v63 = vrot.slane %v310_v58, 2  ;;  %v317_v1 = vadd.f32 %v316_v59, %v315_v56  ;;  %v148_v3 = vrot.slane %v147_v60, 1  ;;  %v154_v4 = vadd.f32 %v153_v61, %v152_v54 }
  0xa3   :  { %v471_v5 = vrot.slane %v464_v62, %v139_v27  ;;  %v631_v27 = vld [vmem:[%s909_s0 + $0x50] sm:$0xff] }
  0xa4   :  { %v149_v6 = vadd.f32 %v148_v3, %v147_v60  ;;  %v155_v7 = vrot.slane %v154_v4, 1  ;;  %v312_v8 = vadd.f32 %v311_v63, %v310_v58  ;;  %v318_v9 = vrot.slane %v317_v1, 2  ;;  %v634_v58 = vld [vmem:[%s910_s1 + $0x2] ss:$0 sm:$0xff] }
  0xa5   :  { %v472_v13 = vcombine.high %v471_v5, %v736_v2  ;;  %v473_v14 = vsel %vm142_vm3, %v471_v5, 0.0  ;;  %v701_v35 = vpack.c.bf16 %v632_v28, %v631_v27 }
  0xa6   :  { %v474_v15 = vrot.slane %v473_v14, 4  ;;  %v156_v16 = vadd.f32 %v155_v7, %v154_v4  ;;  %v313_v17 = vrot.slane %v312_v8, 1  ;;  %v319_v19 = vadd.f32 %v318_v9, %v317_v1 }
  0xa7   :  { %v480_v18 = vsel %vm142_vm3, %v472_v13, 0.0  ;;  %v157_v23 = vmul.f32 0.125, %v149_v6  ;;  %v105_v1 = vand.u32 127, %v104_v11 }
  0xa8   :  { %v475_v21 = vadd.f32 %v474_v15, %v473_v14  ;;  %v481_v22 = vrot.slane %v480_v18, 4  ;;  %v158_v24 = vmul.f32 0.125, %v156_v16  ;;  %v314_v25 = vadd.f32 %v313_v17, %v312_v8 }
  0xa9   :  { %v320_v26 = vrot.slane %v319_v19, 1 }
  0xaa   :  { %v476_v29 = vrot.slane %v475_v21, 2  ;;  %v482_v30 = vadd.f32 %v481_v22, %v480_v18  ;;  %v172_v31 = vsel %vm48_vm1, %v158_v24, %v157_v23  ;;  %v322_v36 = vmul.f32 0.125, %v314_v25 }
  0xab   :  { %661 = vmatmul.mubr.msk.f32.vlgmr.msra.gmra.mrb[0].mxu0 %vm173_vm4, %v172_v31  ;;  %v321_v32 = vadd.f32 %v320_v26, %v319_v19 }
  0xac   :  { %v477_v33 = vadd.f32 %v476_v29, %v475_v21  ;;  %v483_v34 = vrot.slane %v482_v30, 2  ;;  %699 = vmatpush3.bf16.msra.mxu0 %v698_v20  ;;  %682 = vmatprep.mubr.msk.f32.mxu0 %vm741_vm2, %v736_v2 }
  0xad   :  { %v323_v37 = vmul.f32 0.125, %v321_v32  ;;  %700 = vmatprep.subr.bf16.mxu0 %v740_v0  ;;  %v618_v0 = vld [vmem:[%s910_s1] ss:$0 sm:$0xff]  ;;  %s744_s1 = smov [#allocation3]  }
  0xae   :  { %v478_v38 = vrot.slane %v477_v33, 1  ;;  %v484_v39 = vadd.f32 %v483_v34, %v482_v30  ;;  %s610_s6 = sshll.u32 %s744_s1, 4  ;;  %s611_s6 = int_to_ptr.vmem [resolvable:$true] %s610_s6 }
  0xaf   :  { %v339_v40 = vsel %vm48_vm1, %v323_v37, %v322_v36  ;;  %s712_s7 = scalar_lea.vmem %s611_s6, 32  ;;  %p717_p1 = scmp.lt.s32.totalorder %s611_s6, %s611_s6 }
  0xb0   :  { %672 = vmatmul.mubr.msk.f32.vlgmr.msra.gmra.mrb[0].mxu1 %vm173_vm4, %v339_v40  ;;  %702 = vmatpush3.bf16.msra.mxu0 %v701_v35  ;;  %v479_v41 = vadd.f32 %v478_v38, %v477_v33  ;;  %v485_v42 = vrot.slane %v484_v39, 1  ;;  %p713_p0 = scmp.ne.s32.totalorder %s611_s6, %s712_s7  ;;  %p718_p2 = scmp.lt.s32.totalorder %s712_s7, %s712_s7 }
  0xb2   :  { %v486_v43 = vadd.f32 %v485_v42, %v484_v39  ;;  %v487_v44 = vmul.f32 0.125, %v479_v41  ;;  %p719_p3 = por %p718_p2, %p717_p1 }
  0xb4   :  { %v488_v45 = vmul.f32 0.125, %v486_v43  ;;  %p720_p4 = pnand %p719_p3, %p713_p0 }
  0xb6   :  { %v504_v46 = vsel %vm48_vm1, %v488_v45, %v487_v44 }
  0xb7   :  { %683 = vmatmul.mubr.msk.f32.vlgmr.msra.gmra.mrb[2].mxu0 %vm173_vm4, %v504_v46 }
 0x17e   :  { %v242_v47 = vpop.f32.mrb[0].mxu0 }
 0x17f   :  { %v243_v48 = vadd.f32 %v618_v0, %v242_v47  ;;  %v662_v49 = vpop.f32.mrb[1].mxu0 }
 0x181   :  { %v246_v50 = vmax.f32 %v243_v48, 0.0 }
 0x183   :  { %v408_v52 = vpop.f32.mrb[0].mxu1  ;;  %v248_v53 = vsel %vm247_vm5, %v246_v50, -inf }
 0x184   :  { %v409_v54 = vadd.f32 %v626_v51, %v408_v52  ;;  %v673_v55 = vpop.f32.mrb[1].mxu1  ;;  %249 = vmax.xlane.f32.xlu1 %v248_v53 }
 0x186   :  { %v412_v56 = vmax.f32 %v409_v54, 0.0 }
 0x188   :  { %v413_v57 = vsel %vm247_vm5, %v412_v56, -inf }
 0x189   :  { %414 = vmax.xlane.f32.xlu0 %v413_v57 }
 0x18a   :  { %v573_v59 = vpop.f32.mrb[2].mxu0 }
 0x18b   :  { %v574_v60 = vadd.f32 %v634_v58, %v573_v59  ;;  %v684_v61 = vpop.f32.mrb[3].mxu0 }
 0x18d   :  { %v577_v62 = vmax.f32 %v574_v60, 0.0 }
 0x18f   :  { %v578_v63 = vsel %vm247_vm5, %v577_v62, -inf }
 0x190   :  { %579 = vmax.xlane.f32.xlu0 %v578_v63 }
 0x211   :  { %v250_v3 = vpop.xlane.xlu1 %249 }
 0x212   :  { %vm251_vm6 = vcmp.eq.f32.partialorder %v246_v50, %v250_v3 }
 0x213   :  { %v252_v4 = vsel %vm251_vm6, %v105_v1, 16 }
 0x214   :  { %v253_v5 = vsel %vm247_vm5, %v252_v4, 2147483647 }
 0x215   :  { %v255_v6 = vshra.s32 %v253_v5, 16  ;;  %v254_v18 = vand.u32 65535, %v253_v5 }
 0x216   :  { %v415_v7 = vpop.xlane.xlu0 %414 }
 0x217   :  { %vm416_vm7 = vcmp.eq.f32.partialorder %v412_v56, %v415_v7  ;;  %v257_v8 = vcvt.s32.f32 %v255_v6  ;;  %v256_v20 = vcvt.s32.f32 %v254_v18 }
 0x218   :  { %v417_v9 = vsel %vm416_vm7, %v105_v1, 16 }
 0x219   :  { %v418_v10 = vsel %vm247_vm5, %v417_v9, 2147483647  ;;  %258 = vmin.xlane.f32.xlu1 %v257_v8 }
 0x21a   :  { %v420_v12 = vshra.s32 %v418_v10, 16  ;;  %v419_v21 = vand.u32 65535, %v418_v10 }
 0x21c   :  { %v422_v13 = vcvt.s32.f32 %v420_v12  ;;  %v421_v24 = vcvt.s32.f32 %v419_v21 }
 0x21d   :  { %v580_v14 = vpop.xlane.xlu0 %579 }
 0x21e   :  { %423 = vmin.xlane.f32.xlu0 %v422_v13  ;;  %vm581_vm8 = vcmp.eq.f32.partialorder %v577_v62, %v580_v14 }
 0x21f   :  { %v582_v15 = vsel %vm581_vm8, %v105_v1, 16 }
 0x220   :  { %v583_v11 = vsel %vm247_vm5, %v582_v15, 2147483647 }
 0x221   :  { %v585_v16 = vshra.s32 %v583_v11, 16  ;;  %v584_v26 = vand.u32 65535, %v583_v11 }
 0x223   :  { %v587_v17 = vcvt.s32.f32 %v585_v16  ;;  %v586_v28 = vcvt.s32.f32 %v584_v26 }
 0x225   :  { %588 = vmin.xlane.f32.xlu1 %v587_v17 }
 0x2a6   :  { %v259_v19 = vpop.xlane.xlu1 %258 }
 0x2a7   :  { %vm260_vm9 = vcmp.eq.f32.partialorder %v257_v8, %v259_v19  ;;  %v265_v32 = vcvt.f32.s32 %v259_v19 }
 0x2a8   :  { %v261_v22 = vsel %vm260_vm9, %v256_v20, inf }
 0x2a9   :  { %262 = vmin.xlane.f32.xlu0 %v261_v22  ;;  %v266_v37 = vshll.u32 %v265_v32, 16 }
 0x2ab   :  { %v424_v23 = vpop.xlane.xlu0 %423 }
 0x2ac   :  { %vm425_vm10 = vcmp.eq.f32.partialorder %v422_v13, %v424_v23  ;;  %v430_v30 = vcvt.f32.s32 %v424_v23 }
 0x2ad   :  { %v426_v25 = vsel %vm425_vm10, %v421_v24, inf }
 0x2ae   :  { %427 = vmin.xlane.f32.xlu1 %v426_v25  ;;  %v431_v35 = vshll.u32 %v430_v30, 16 }
 0x2b2   :  { %v589_v27 = vpop.xlane.xlu1 %588 }
 0x2b3   :  { %vm590_vm11 = vcmp.eq.f32.partialorder %v587_v17, %v589_v27  ;;  %v595_v39 = vcvt.f32.s32 %v589_v27 }
 0x2b4   :  { %v591_v29 = vsel %vm590_vm11, %v586_v28, inf }
 0x2b5   :  { %592 = vmin.xlane.f32.xlu0 %v591_v29  ;;  %v596_v42 = vshll.u32 %v595_v39, 16 }
 0x336   :  { %v263_v31 = vpop.xlane.xlu0 %262 }
 0x337   :  { %v264_v33 = vcvt.f32.s32 %v263_v31 }
 0x339   :  { %v267_v40 = vadd.s32 %v266_v37, %v264_v33 }
 0x33b   :  { %v428_v34 = vpop.xlane.xlu1 %427  ;;  %vm268_vm13 = vcmp.eq.s32.totalorder %v105_v1, %v267_v40 }
 0x33c   :  { %v429_v36 = vcvt.f32.s32 %v428_v34  ;;  %v620_v46 = vsel %vm268_vm13, 1.0, %v736_v2 }
 0x33e   :  { %v432_v38 = vadd.s32 %v431_v35, %v429_v36 }
 0x340   :  { %vm433_vm12 = vcmp.eq.s32.totalorder %v105_v1, %v432_v38 }
 0x341   :  { %v628_v44 = vsel %vm433_vm12, 1.0, %v736_v2 }
 0x342   :  { %v593_v41 = vpop.xlane.xlu0 %592  ;;  %v436_v0 = vadd.f32 %v628_v44, %v620_v46 }
 0x343   :  { %v594_v43 = vcvt.f32.s32 %v593_v41 }
 0x345   :  { %v597_v45 = vadd.s32 %v596_v42, %v594_v43 }
 0x347   :  { %vm598_vm14 = vcmp.eq.s32.totalorder %v105_v1, %v597_v45 }
 0x348   :  { %v636_v47 = vsel %vm598_vm14, 1.0, %v736_v2 }
 0x349   :  { %v601_v48 = vadd.f32 %v636_v47, %v436_v0 }
 0x34b   :  { %v602_v49 = vmul.f32 0.33333334, %v601_v48 }
 0x34d   :  { %603 = vst [vmem:[#allocation3] sm:$0x3] %v602_v49 }
 0x34e   :  { %723 = shalt.err (!%p720_p4)
}
 0x34f   :  { %s724_s10 = scalar_lea.hbm %s914_s5, 32 }
 0x350   :  { %p725_p5 = scmp.ne.s32.totalorder %s914_s5, %s724_s10  ;;  %p728_p6 = scmp.lt.u32.totalorder %s724_s10, %s914_s5 }
 0x352   :  { %p730_p7 = pnand %p728_p6, %p725_p5 }
 0x354   :  { %733 = shalt.err (!%p730_p7)
}
 0x355   :  { %613 = dma.vmem_to_hbm [thread:$0]  %s611_s6, 32, %s914_s5, [#allocation4]  }
 0x356   :  { %734 = dma.done.wait [#allocation4], 32  }
 0x357   :  { %735 = vsyncadd [#allocation4], 4294967264 }
 0x358   :  { %617 = vsyncpa [#allocation4], 1 }

</bundles_post_ra>
